<compile_context>
chip_gen: v6e
topology: v6e:2x2x1
jax: 0.10.0
libtpu: 0.0.40
codegen_flags: <defaults>
</compile_context>

<pallas_src>
import functools

import jax
import jax.numpy as jnp
import numpy as np
from jax import lax
from jax.experimental import pallas as pl
from jax.experimental.pallas import tpu as pltpu


def _attention_kernel(x_ref, wqkv_ref, wproj_ref, bproj_ref, o_ref, acc_ref,
                      *, hd, h_blk, n_valid, n_pad, bf16_exp, approx_recip):
    """One grid step = one (batch, head-block) pair.

    x_ref     : (1, Np, C)            activations for this batch element
    wqkv_ref  : (G, C, 3*h_blk*hd)    ALL qkv weights (resident; constant index map)
    wproj_ref : (G, h_blk*hd, C)      ALL proj weights (resident)
    bproj_ref : (1, C)                output-projection bias
    o_ref     : (1, Np, C)            output tile (same block across head axis)
    acc_ref   : (Np, C) f32           running sum of per-head projected outputs
    """
    g = pl.program_id(1)
    blk = h_blk * hd

    @pl.when(g == 0)
    def _init():
        # Start from the projection bias so the final accumulator equals
        # bias + sum_h (head_out_h @ Wproj_h) == concat_h(head_out) @ Wproj + b.
        acc_ref[...] = jnp.broadcast_to(
            bproj_ref[...].astype(jnp.float32), acc_ref.shape)

    x = x_ref[0]                                   # (Np, C)
    in_dtype = x.dtype

    # Fused q/k/v projection for this head block: one wide matmul
    # (3*h_blk*hd output lanes) instead of 3*h_blk 64-lane dots.
    # Softmax scale is already folded into the Wq columns.
    qkv = jnp.dot(x, wqkv_ref[g], preferred_element_type=jnp.float32)  # (Np, 3*blk) f32
    q_all = qkv[:, :blk].astype(in_dtype)
    k_all = qkv[:, blk:2 * blk].astype(in_dtype)
    v_all = qkv[:, 2 * blk:].astype(in_dtype)

    # Static mask for padded key columns (n_valid / n_pad are compile-time).
    if n_valid < n_pad:
        col = lax.broadcasted_iota(jnp.int32, (1, n_pad), 1)
        key_bias = jnp.where(col < n_valid, 0.0, -1e30).astype(jnp.float32)
    else:
        key_bias = None

    pv_parts = []
    for h in range(h_blk):                          # static unroll over heads in block
        qh = q_all[:, h * hd:(h + 1) * hd]
        kh = k_all[:, h * hd:(h + 1) * hd]
        vh = v_all[:, h * hd:(h + 1) * hd]

        # scores = q @ k^T without an explicit XLU transpose of k.
        s = lax.dot_general(qh, kh,
                            dimension_numbers=(((1,), (1,)), ((), ())),
                            preferred_element_type=jnp.float32)        # (Np, Np) f32
        if key_bias is not None:
            s = s + key_bias

        m = jnp.max(s, axis=-1, keepdims=True)                         # f32
        if bf16_exp:
            # bf16 EUP exp (v6e/v7x); stats stay f32.  Do not use on v5e.
            p = jnp.exp((s - m).astype(jnp.bfloat16))
            row_sum = jnp.sum(p, axis=-1, keepdims=True, dtype=jnp.float32)
        else:
            p = jnp.exp(s - m)
            row_sum = jnp.sum(p, axis=-1, keepdims=True)

        pv = jnp.dot(p.astype(in_dtype), vh,
                     preferred_element_type=jnp.float32)               # (Np, hd) f32
        pv = pv * pl.reciprocal(row_sum, approx=approx_recip)          # deferred normalize
        pv_parts.append(pv.astype(in_dtype))

    pv_cat = pv_parts[0] if h_blk == 1 else jnp.concatenate(pv_parts, axis=-1)

    # This head block's slice of the output projection: contraction depth
    # h_blk*hd (>=128 at production shapes).  f32 accumulation.
    acc_ref[...] += jnp.dot(pv_cat, wproj_ref[g],
                            preferred_element_type=jnp.float32)        # (Np, C)

    @pl.when(g == pl.num_programs(1) - 1)
    def _finalize():
        o_ref[0] = acc_ref[...].astype(o_ref.dtype)


def attention_forward(x, wqkv, wproj, bproj, num_heads, *,
                      bf16_exp=None, head_block=None):
    """Forward pass of the Attention module (with_qkv=True, qkv_bias=False).

    x     : (B, N, C)
    wqkv  : (C, 3C)  (in, out) layout; column order must factor as (3, H, hd)
    wproj : (C, C)   (in, out) layout
    bproj : (C,)
    bf16_exp: None -> auto (enabled for bf16 inputs).  Pass False on v5e.
    """
    B, N, C = x.shape
    assert wqkv.shape == (C, 3 * C), "wqkv must be (in_features, 3*in_features)"
    assert wproj.shape == (C, C), "wproj must be (in_features, out_features)"
    assert bproj.shape == (C,)
    assert C % num_heads == 0
    H = num_heads
    hd = C // H
    scale = float(hd ** -0.5)

    # Head-block size: the largest divisor of H whose block width (h_blk*hd)
    # stays <= 256 lanes (MXU width on v6e/v7x).
    if head_block is None:
        head_block = 1
        for cand in range(1, H + 1):
            if H % cand == 0 and cand * hd <= 256:
                head_block = cand
    assert H % head_block == 0
    G = H // head_block
    blk = head_block * hd

    in_dtype = jnp.dtype(x.dtype)
    if bf16_exp is None:
        bf16_exp = (in_dtype == jnp.dtype(jnp.bfloat16))
    # Exact reciprocal on the pure-f32 path, fast EUP approx on the bf16 path
    # (MXU precision dominates there; documented ~2^-12 relative error).
    approx_recip = in_dtype != jnp.dtype(jnp.float32)

    # Pad the token axis to a sublane multiple (8 for f32, 16 for bf16) so all
    # (Np, C) / (Np, Np) / (Np, hd) tiles are full-vreg.
    sub = max(8, 32 // in_dtype.itemsize)
    Np = ((N + sub - 1) // sub) * sub
    x_pad = jnp.pad(x, ((0, 0), (0, Np - N), (0, 0))) if Np != N else x

    # Weight re-layout (wrapper-side, one-time):
    #  * softmax scale folded into the Wq columns,
    #  * per head-block, column order [q heads | k heads | v heads], hd-wide each.
    w4 = wqkv.reshape(C, 3, H, hd)
    w4 = w4.at[:, 0].multiply(scale)
    wqkv_g = (w4.reshape(C, 3, G, head_block, hd)
                .transpose(2, 0, 1, 3, 4)
                .reshape(G, C, 3 * blk))                 # (G, C, 3*blk)
    wproj_g = wproj.reshape(G, blk, C)                   # (G, blk, C)
    bproj_2d = bproj.reshape(1, C)

    kernel = functools.partial(
        _attention_kernel, hd=hd, h_blk=head_block, n_valid=N, n_pad=Np,
        bf16_exp=bool(bf16_exp), approx_recip=bool(approx_recip))

    itemsize = in_dtype.itemsize
    cost = pl.CostEstimate(
        flops=int(2 * B * (4 * N * C * C + 2 * N * N * C)),
        transcendentals=int(B * H * N * N),
        bytes_accessed=int(B * Np * C * itemsize * 2          # x in + out
                           + wqkv_g.size * wqkv_g.dtype.itemsize
                           + wproj_g.size * wproj_g.dtype.itemsize
                           + bproj.size * bproj.dtype.itemsize))

    out = pl.pallas_call(
        kernel,
        out_shape=jax.ShapeDtypeStruct((B, Np, C), x.dtype),
        grid=(B, G),
        in_specs=[
            # Per-batch activations (pipelined over b).
            pl.BlockSpec((1, Np, C), lambda b, g: (b, 0, 0)),
            # Full weight set resident in VMEM (constant index maps -> DMA'd once).
            pl.BlockSpec((G, C, 3 * blk), lambda b, g: (0, 0, 0)),
            pl.BlockSpec((G, blk, C), lambda b, g: (0, 0, 0)),
            pl.BlockSpec((1, C), lambda b, g: (0, 0)),
        ],
        out_specs=pl.BlockSpec((1, Np, C), lambda b, g: (b, 0, 0)),
        scratch_shapes=[pltpu.VMEM((Np, C), jnp.float32)],
        compiler_params=pltpu.CompilerParams(
            dimension_semantics=("parallel", "arbitrary")),
        cost_estimate=cost,
    )(x_pad, wqkv_g, wproj_g, bproj_2d)

    return out[:, :N, :] if Np != N else out


def attention_reference(x, wqkv, wproj, bproj, num_heads):
    """Pure-JAX reference matching the PyTorch forward."""
    B, N, C = x.shape
    hd = C // num_heads
    scale = hd ** -0.5
    qkv = x @ wqkv                                            # (B, N, 3C)
    qkv = qkv.reshape(B, N, 3, num_heads, hd).transpose(2, 0, 3, 1, 4)
    q, k, v = qkv[0], qkv[1], qkv[2]                          # (B, H, N, hd)
    attn = jnp.einsum("bhnd,bhmd->bhnm", q, k) * scale
    attn = jax.nn.softmax(attn, axis=-1)
    o = jnp.einsum("bhnm,bhmd->bhnd", attn, v)
    o = o.transpose(0, 2, 1, 3).reshape(B, N, C)
    return o @ wproj + bproj


if __name__ == "__main__":
    num_heads = 4
    key = jax.random.PRNGKey(0)
    kx, kqkv, kproj, kbias, kx2 = jax.random.split(key, 5)

    # Small, module-consistent shapes.  N=13 deliberately exercises the
    # sublane padding + key-column masking path.
    B, N, C = 2, 13, 32
    x = jax.random.normal(kx, (B, N, C), dtype=jnp.float32)
    wqkv = jax.random.normal(kqkv, (C, 3 * C), dtype=jnp.float32) * 0.05
    wproj = jax.random.normal(kproj, (C, C), dtype=jnp.float32) * 0.05
    bproj = jax.random.normal(kbias, (C,), dtype=jnp.float32) * 0.01

    # f32 path (exact reciprocal, f32 softmax).
    ref = attention_reference(x, wqkv, wproj, bproj, num_heads)
    out = jax.block_until_ready(attention_forward(x, wqkv, wproj, bproj, num_heads))
    np.testing.assert_allclose(np.asarray(out), np.asarray(ref),
                               rtol=1e-3, atol=1e-3)

    # bf16 path (bf16 MXU operands + bf16 exp, f32 stats/accumulation).
    xb = jax.random.normal(kx2, (2, 8, C), dtype=jnp.float32)
    refb = attention_reference(xb, wqkv, wproj, bproj, num_heads)
    outb = attention_forward(xb.astype(jnp.bfloat16), wqkv.astype(jnp.bfloat16),
                             wproj.astype(jnp.bfloat16), bproj.astype(jnp.bfloat16),
                             num_heads)
    outb = jax.block_until_ready(outb)
    np.testing.assert_allclose(np.asarray(outb.astype(jnp.float32)),
                               np.asarray(refb), rtol=5e-2, atol=5e-2)

    print("KERNEL_OK")
</pallas_src>

<mosaic_0001>
module attributes {stable_mosaic.version = 11 : i64} {
  func.func @_attention_kernel(%arg0: i32, %arg1: i32, %arg2: memref<1x16x32xf32, #tpu.memory_space<vmem>>, %arg3: memref<1x32x96xf32, #tpu.memory_space<vmem>>, %arg4: memref<1x32x32xf32, #tpu.memory_space<vmem>>, %arg5: memref<1x32xf32, #tpu.memory_space<vmem>>, %arg6: memref<1x16x32xf32, #tpu.memory_space<vmem>>, %arg7: memref<16x32xf32, #tpu.memory_space<vmem>>) attributes {dimension_semantics = [#tpu.dimension_semantics<parallel>, #tpu.dimension_semantics<arbitrary>], iteration_bounds = array<i64: 2, 1>, scalar_prefetch = 0 : i64, scratch_operands = 1 : i64, tpu.core_type = #tpu.core_type<tc>, window_params = [{transform_indices = @transform_0, window_bounds = array<i64: 1, 16, 32>}, {pipeline_mode = #tpu.pipeline_mode<synchronous>, transform_indices = @transform_1, window_bounds = array<i64: 1, 32, 96>}, {pipeline_mode = #tpu.pipeline_mode<synchronous>, transform_indices = @transform_2, window_bounds = array<i64: 1, 32, 32>}, {pipeline_mode = #tpu.pipeline_mode<synchronous>, transform_indices = @transform_3, window_bounds = array<i64: 1, 32>}, {transform_indices = @transform_4, window_bounds = array<i64: 1, 16, 32>}]} {
    %c0_i32 = arith.constant 0 : i32
    %0 = arith.cmpi eq, %arg1, %c0_i32 : i32
    %1 = arith.extui %0 : i1 to i32
    %c0_i32_0 = arith.constant 0 : i32
    %2 = arith.cmpi ne, %1, %c0_i32_0 : i32
    scf.if %2 {
      %c0_32 = arith.constant 0 : index
      %c0_33 = arith.constant 0 : index
      %97 = vector.load %arg5[%c0_32, %c0_33] : memref<1x32xf32, #tpu.memory_space<vmem>>, vector<1x32xf32>
      %98 = vector.shape_cast %97 : vector<1x32xf32> to vector<1x32xf32>
      %99 = vector.broadcast %98 : vector<1x32xf32> to vector<16x32xf32>
      %c0_34 = arith.constant 0 : index
      %c0_35 = arith.constant 0 : index
      %100 = vector.load %arg7[%c0_34, %c0_35] : memref<16x32xf32, #tpu.memory_space<vmem>>, vector<16x32xf32>
      tpu.vector_store %arg7[%c0_34, %c0_35], %99 {strides = array<i32>} : memref<16x32xf32, #tpu.memory_space<vmem>>, vector<16x32xf32>,
    } else {
    }
    %c0 = arith.constant 0 : index
    %c0_1 = arith.constant 0 : index
    %c0_2 = arith.constant 0 : index
    %3 = vector.load %arg2[%c0, %c0_1, %c0_2] : memref<1x16x32xf32, #tpu.memory_space<vmem>>, vector<1x16x32xf32>
    %4 = vector.shape_cast %3 : vector<1x16x32xf32> to vector<16x32xf32>
    %5 = arith.index_cast %arg1 : i32 to index
    %c0_3 = arith.constant 0 : index
    %c0_4 = arith.constant 0 : index
    %6 = vector.load %arg3[%5, %c0_3, %c0_4] : memref<1x32x96xf32, #tpu.memory_space<vmem>>, vector<1x32x96xf32>
    %7 = vector.shape_cast %6 : vector<1x32x96xf32> to vector<32x96xf32>
    %cst = arith.constant dense<0.000000e+00> : vector<16x96xf32>
    %8 = tpu.matmul %4, %7, %cst {dimension_numbers = #tpu.dot_dimension_numbers<[1], [0], [0], [1], [0, 0, 1, 1], [], []>} : vector<16x32xf32>, vector<32x96xf32>, vector<16x96xf32> -> vector<16x96xf32>
    %9 = vector.extract_strided_slice %8 {offsets = [0, 0], sizes = [16, 32], strides = [1, 1]} : vector<16x96xf32> to vector<16x32xf32>
    %10 = vector.extract_strided_slice %8 {offsets = [0, 32], sizes = [16, 32], strides = [1, 1]} : vector<16x96xf32> to vector<16x32xf32>
    %11 = vector.extract_strided_slice %8 {offsets = [0, 64], sizes = [16, 32], strides = [1, 1]} : vector<16x96xf32> to vector<16x32xf32>
    %12 = tpu.iota {dimensions = array<i32: 1>} : vector<1x16xi32>
    %c13_i32 = arith.constant 13 : i32
    %13 = vector.broadcast %c13_i32 : i32 to vector<1x16xi32>
    %14 = arith.cmpi slt, %12, %13 : vector<1x16xi32>
    %cst_5 = arith.constant 0.000000e+00 : f32
    %cst_6 = arith.constant -1.000000e+30 : f32
    %15 = vector.broadcast %cst_5 : f32 to vector<1x16xf32>
    %16 = vector.broadcast %cst_6 : f32 to vector<1x16xf32>
    %17 = arith.select %14, %15, %16 : vector<1x16xi1>, vector<1x16xf32>
    %18 = vector.extract_strided_slice %9 {offsets = [0, 0], sizes = [16, 8], strides = [1, 1]} : vector<16x32xf32> to vector<16x8xf32>
    %19 = vector.extract_strided_slice %10 {offsets = [0, 0], sizes = [16, 8], strides = [1, 1]} : vector<16x32xf32> to vector<16x8xf32>
    %20 = vector.extract_strided_slice %11 {offsets = [0, 0], sizes = [16, 8], strides = [1, 1]} : vector<16x32xf32> to vector<16x8xf32>
    %cst_7 = arith.constant dense<0.000000e+00> : vector<16x16xf32>
    %21 = tpu.matmul %18, %19, %cst_7 {dimension_numbers = #tpu.dot_dimension_numbers<[1], [1], [0], [0], [0, 0, 1, 0], [], []>} : vector<16x8xf32>, vector<16x8xf32>, vector<16x16xf32> -> vector<16x16xf32>
    %22 = vector.broadcast %17 : vector<1x16xf32> to vector<16x16xf32>
    %23 = arith.addf %21, %22 : vector<16x16xf32>
    %cst_8 = arith.constant dense<0xFF800000> : vector<16xf32>
    %24 = vector.multi_reduction <maximumf>, %23, %cst_8 [1] : vector<16x16xf32> to vector<16xf32>
    %25 = vector.shape_cast %24 : vector<16xf32> to vector<16x1xf32>
    %26 = vector.broadcast %25 : vector<16x1xf32> to vector<16x16xf32>
    %27 = arith.subf %23, %26 : vector<16x16xf32>
    %28 = math.exp %27 : vector<16x16xf32>
    %cst_9 = arith.constant dense<0.000000e+00> : vector<16xf32>
    %29 = vector.multi_reduction <add>, %28, %cst_9 [1] : vector<16x16xf32> to vector<16xf32>
    %30 = vector.shape_cast %29 : vector<16xf32> to vector<16x1xf32>
    %cst_10 = arith.constant dense<0.000000e+00> : vector<16x8xf32>
    %31 = tpu.matmul %28, %20, %cst_10 {dimension_numbers = #tpu.dot_dimension_numbers<[1], [0], [0], [1], [0, 0, 1, 1], [], []>} : vector<16x16xf32>, vector<16x8xf32>, vector<16x8xf32> -> vector<16x8xf32>
    %32 = tpu.reciprocal %30 : vector<16x1xf32> -> vector<16x1xf32>
    %33 = vector.broadcast %32 : vector<16x1xf32> to vector<16x8xf32>
    %34 = arith.mulf %31, %33 : vector<16x8xf32>
    %35 = vector.extract_strided_slice %9 {offsets = [0, 8], sizes = [16, 8], strides = [1, 1]} : vector<16x32xf32> to vector<16x8xf32>
    %36 = vector.extract_strided_slice %10 {offsets = [0, 8], sizes = [16, 8], strides = [1, 1]} : vector<16x32xf32> to vector<16x8xf32>
    %37 = vector.extract_strided_slice %11 {offsets = [0, 8], sizes = [16, 8], strides = [1, 1]} : vector<16x32xf32> to vector<16x8xf32>
    %cst_11 = arith.constant dense<0.000000e+00> : vector<16x16xf32>
    %38 = tpu.matmul %35, %36, %cst_11 {dimension_numbers = #tpu.dot_dimension_numbers<[1], [1], [0], [0], [0, 0, 1, 0], [], []>} : vector<16x8xf32>, vector<16x8xf32>, vector<16x16xf32> -> vector<16x16xf32>
    %39 = vector.broadcast %17 : vector<1x16xf32> to vector<16x16xf32>
    %40 = arith.addf %38, %39 : vector<16x16xf32>
    %cst_12 = arith.constant dense<0xFF800000> : vector<16xf32>
    %41 = vector.multi_reduction <maximumf>, %40, %cst_12 [1] : vector<16x16xf32> to vector<16xf32>
    %42 = vector.shape_cast %41 : vector<16xf32> to vector<16x1xf32>
    %43 = vector.broadcast %42 : vector<16x1xf32> to vector<16x16xf32>
    %44 = arith.subf %40, %43 : vector<16x16xf32>
    %45 = math.exp %44 : vector<16x16xf32>
    %cst_13 = arith.constant dense<0.000000e+00> : vector<16xf32>
    %46 = vector.multi_reduction <add>, %45, %cst_13 [1] : vector<16x16xf32> to vector<16xf32>
    %47 = vector.shape_cast %46 : vector<16xf32> to vector<16x1xf32>
    %cst_14 = arith.constant dense<0.000000e+00> : vector<16x8xf32>
    %48 = tpu.matmul %45, %37, %cst_14 {dimension_numbers = #tpu.dot_dimension_numbers<[1], [0], [0], [1], [0, 0, 1, 1], [], []>} : vector<16x16xf32>, vector<16x8xf32>, vector<16x8xf32> -> vector<16x8xf32>
    %49 = tpu.reciprocal %47 : vector<16x1xf32> -> vector<16x1xf32>
    %50 = vector.broadcast %49 : vector<16x1xf32> to vector<16x8xf32>
    %51 = arith.mulf %48, %50 : vector<16x8xf32>
    %52 = vector.extract_strided_slice %9 {offsets = [0, 16], sizes = [16, 8], strides = [1, 1]} : vector<16x32xf32> to vector<16x8xf32>
    %53 = vector.extract_strided_slice %10 {offsets = [0, 16], sizes = [16, 8], strides = [1, 1]} : vector<16x32xf32> to vector<16x8xf32>
    %54 = vector.extract_strided_slice %11 {offsets = [0, 16], sizes = [16, 8], strides = [1, 1]} : vector<16x32xf32> to vector<16x8xf32>
    %cst_15 = arith.constant dense<0.000000e+00> : vector<16x16xf32>
    %55 = tpu.matmul %52, %53, %cst_15 {dimension_numbers = #tpu.dot_dimension_numbers<[1], [1], [0], [0], [0, 0, 1, 0], [], []>} : vector<16x8xf32>, vector<16x8xf32>, vector<16x16xf32> -> vector<16x16xf32>
    %56 = vector.broadcast %17 : vector<1x16xf32> to vector<16x16xf32>
    %57 = arith.addf %55, %56 : vector<16x16xf32>
    %cst_16 = arith.constant dense<0xFF800000> : vector<16xf32>
    %58 = vector.multi_reduction <maximumf>, %57, %cst_16 [1] : vector<16x16xf32> to vector<16xf32>
    %59 = vector.shape_cast %58 : vector<16xf32> to vector<16x1xf32>
    %60 = vector.broadcast %59 : vector<16x1xf32> to vector<16x16xf32>
    %61 = arith.subf %57, %60 : vector<16x16xf32>
    %62 = math.exp %61 : vector<16x16xf32>
    %cst_17 = arith.constant dense<0.000000e+00> : vector<16xf32>
    %63 = vector.multi_reduction <add>, %62, %cst_17 [1] : vector<16x16xf32> to vector<16xf32>
    %64 = vector.shape_cast %63 : vector<16xf32> to vector<16x1xf32>
    %cst_18 = arith.constant dense<0.000000e+00> : vector<16x8xf32>
    %65 = tpu.matmul %62, %54, %cst_18 {dimension_numbers = #tpu.dot_dimension_numbers<[1], [0], [0], [1], [0, 0, 1, 1], [], []>} : vector<16x16xf32>, vector<16x8xf32>, vector<16x8xf32> -> vector<16x8xf32>
    %66 = tpu.reciprocal %64 : vector<16x1xf32> -> vector<16x1xf32>
    %67 = vector.broadcast %66 : vector<16x1xf32> to vector<16x8xf32>
    %68 = arith.mulf %65, %67 : vector<16x8xf32>
    %69 = vector.extract_strided_slice %9 {offsets = [0, 24], sizes = [16, 8], strides = [1, 1]} : vector<16x32xf32> to vector<16x8xf32>
    %70 = vector.extract_strided_slice %10 {offsets = [0, 24], sizes = [16, 8], strides = [1, 1]} : vector<16x32xf32> to vector<16x8xf32>
    %71 = vector.extract_strided_slice %11 {offsets = [0, 24], sizes = [16, 8], strides = [1, 1]} : vector<16x32xf32> to vector<16x8xf32>
    %cst_19 = arith.constant dense<0.000000e+00> : vector<16x16xf32>
    %72 = tpu.matmul %69, %70, %cst_19 {dimension_numbers = #tpu.dot_dimension_numbers<[1], [1], [0], [0], [0, 0, 1, 0], [], []>} : vector<16x8xf32>, vector<16x8xf32>, vector<16x16xf32> -> vector<16x16xf32>
    %73 = vector.broadcast %17 : vector<1x16xf32> to vector<16x16xf32>
    %74 = arith.addf %72, %73 : vector<16x16xf32>
    %cst_20 = arith.constant dense<0xFF800000> : vector<16xf32>
    %75 = vector.multi_reduction <maximumf>, %74, %cst_20 [1] : vector<16x16xf32> to vector<16xf32>
    %76 = vector.shape_cast %75 : vector<16xf32> to vector<16x1xf32>
    %77 = vector.broadcast %76 : vector<16x1xf32> to vector<16x16xf32>
    %78 = arith.subf %74, %77 : vector<16x16xf32>
    %79 = math.exp %78 : vector<16x16xf32>
    %cst_21 = arith.constant dense<0.000000e+00> : vector<16xf32>
    %80 = vector.multi_reduction <add>, %79, %cst_21 [1] : vector<16x16xf32> to vector<16xf32>
    %81 = vector.shape_cast %80 : vector<16xf32> to vector<16x1xf32>
    %cst_22 = arith.constant dense<0.000000e+00> : vector<16x8xf32>
    %82 = tpu.matmul %79, %71, %cst_22 {dimension_numbers = #tpu.dot_dimension_numbers<[1], [0], [0], [1], [0, 0, 1, 1], [], []>} : vector<16x16xf32>, vector<16x8xf32>, vector<16x8xf32> -> vector<16x8xf32>
    %83 = tpu.reciprocal %81 : vector<16x1xf32> -> vector<16x1xf32>
    %84 = vector.broadcast %83 : vector<16x1xf32> to vector<16x8xf32>
    %85 = arith.mulf %82, %84 : vector<16x8xf32>
    %86 = tpu.concatenate %34, %51, %68, %85 in 1 : vector<16x8xf32>, vector<16x8xf32>, vector<16x8xf32>, vector<16x8xf32> -> vector<16x32xf32>
    %c0_23 = arith.constant 0 : index
    %c0_24 = arith.constant 0 : index
    %87 = vector.load %arg7[%c0_23, %c0_24] : memref<16x32xf32, #tpu.memory_space<vmem>>, vector<16x32xf32>
    %88 = arith.index_cast %arg1 : i32 to index
    %c0_25 = arith.constant 0 : index
    %c0_26 = arith.constant 0 : index
    %89 = vector.load %arg4[%88, %c0_25, %c0_26] : memref<1x32x32xf32, #tpu.memory_space<vmem>>, vector<1x32x32xf32>
    %90 = vector.shape_cast %89 : vector<1x32x32xf32> to vector<32x32xf32>
    %cst_27 = arith.constant dense<0.000000e+00> : vector<16x32xf32>
    %91 = tpu.matmul %86, %90, %cst_27 {dimension_numbers = #tpu.dot_dimension_numbers<[1], [0], [0], [1], [0, 0, 1, 1], [], []>} : vector<16x32xf32>, vector<32x32xf32>, vector<16x32xf32> -> vector<16x32xf32>
    %92 = arith.addf %87, %91 : vector<16x32xf32>
    %c0_28 = arith.constant 0 : index
    %c0_29 = arith.constant 0 : index
    %93 = vector.load %arg7[%c0_28, %c0_29] : memref<16x32xf32, #tpu.memory_space<vmem>>, vector<16x32xf32>
    tpu.vector_store %arg7[%c0_28, %c0_29], %92 {strides = array<i32>} : memref<16x32xf32, #tpu.memory_space<vmem>>, vector<16x32xf32>,
    %c0_i32_30 = arith.constant 0 : i32
    %94 = arith.cmpi eq, %arg1, %c0_i32_30 : i32
    %95 = arith.extui %94 : i1 to i32
    %c0_i32_31 = arith.constant 0 : i32
    %96 = arith.cmpi ne, %95, %c0_i32_31 : i32
    scf.if %96 {
      %c0_32 = arith.constant 0 : index
      %c0_33 = arith.constant 0 : index
      %97 = vector.load %arg7[%c0_32, %c0_33] : memref<16x32xf32, #tpu.memory_space<vmem>>, vector<16x32xf32>
      %c0_34 = arith.constant 0 : index
      %c0_35 = arith.constant 0 : index
      %c0_36 = arith.constant 0 : index
      %98 = vector.load %arg6[%c0_34, %c0_35, %c0_36] : memref<1x16x32xf32, #tpu.memory_space<vmem>>, vector<1x16x32xf32>
      %99 = vector.shape_cast %98 : vector<1x16x32xf32> to vector<16x32xf32>
      %100 = vector.shape_cast %97 : vector<16x32xf32> to vector<1x16x32xf32>
      tpu.vector_store %arg6[%c0_34, %c0_35, %c0_36], %100 {strides = array<i32>} : memref<1x16x32xf32, #tpu.memory_space<vmem>>, vector<1x16x32xf32>,
    } else {
    }
    return
  }
  func.func @transform_0(%arg0: i32, %arg1: i32) -> (i32, i32, i32) {
    %c0_i32 = arith.constant 0 : i32
    %c0_i32_0 = arith.constant 0 : i32
    %c0_i32_1 = arith.constant 0 : i32
    return %arg0, %c0_i32, %c0_i32_0 : i32, i32, i32
  }
  func.func @transform_1(%arg0: i32, %arg1: i32) -> (i32, i32, i32) {
    %c0_i32 = arith.constant 0 : i32
    %c0_i32_0 = arith.constant 0 : i32
    %c0_i32_1 = arith.constant 0 : i32
    %c0_i32_2 = arith.constant 0 : i32
    return %c0_i32, %c0_i32_0, %c0_i32_1 : i32, i32, i32
  }
  func.func @transform_2(%arg0: i32, %arg1: i32) -> (i32, i32, i32) {
    %c0_i32 = arith.constant 0 : i32
    %c0_i32_0 = arith.constant 0 : i32
    %c0_i32_1 = arith.constant 0 : i32
    %c0_i32_2 = arith.constant 0 : i32
    return %c0_i32, %c0_i32_0, %c0_i32_1 : i32, i32, i32
  }
  func.func @transform_3(%arg0: i32, %arg1: i32) -> (i32, i32) {
    %c0_i32 = arith.constant 0 : i32
    %c0_i32_0 = arith.constant 0 : i32
    %c0_i32_1 = arith.constant 0 : i32
    return %c0_i32, %c0_i32_0 : i32, i32
  }
  func.func @transform_4(%arg0: i32, %arg1: i32) -> (i32, i32, i32) {
    %c0_i32 = arith.constant 0 : i32
    %c0_i32_0 = arith.constant 0 : i32
    %c0_i32_1 = arith.constant 0 : i32
    return %arg0, %c0_i32, %c0_i32_0 : i32, i32, i32
  }
}

</mosaic_0001>

<bundles_post_ra>
// kernel: tpu_custom_call.1
= control target key start
LH: loop header
LB: loop body
LE: loop exit
PB: predicated region body
PF: predicated region fallthrough
CT: control target
= control target key end

     0   :  { %9 = vsyncpa [#allocation4], 0  ;;  %s2275_s0 = inlined_call_operand.hbm [shape: f32[2,16,32], index: 0, kind: input, shape index: {}]   ;;  %s2276_s1 = inlined_call_operand.hbm [shape: f32[1,32,96], index: 1, kind: input, shape index: {}]   ;;  %s2277_s2 = inlined_call_operand.hbm [shape: f32[1,32,32], index: 2, kind: input, shape index: {}]   ;;  %s2278_s3 = inlined_call_operand.vmem [shape: f32[1,32], index: 3, kind: input, shape index: {}]   ;;  %s2279_s4 = inlined_call_operand.hbm [shape: f32[2,16,32], index: 4, kind: output, shape index: {}]  }
   0x1   :  { %11 = vsyncpa [#allocation4 + $0x1], 0 }
   0x2   :  { %12 = vsyncpa [#allocation7], 0 }
   0x3   :  { %13 = vsyncpa [#allocation5], 0 }
   0x4   :  { %15 = vsyncpa [#allocation5 + $0x1], 0  ;;  %s1931_s15 = smov 0   ;;  %s1933_s16 = smov 0  }
   0x5   :  { %s1935_s17 = smov 0   ;;  %s1937_s18 = smov 0  }
   0x6   :  { %s1939_s19 = smov 0   ;;  %s1941_s20 = smov 0  }
   0x7 LB: > { %s1413_s21 = sadd.s32 4294967295, %s1882_s20   ;;  %s1414_s22 = sadd.s32 4294967294, %s1882_s20   ;;  %s1882_s20 = sphi %s1941_s20, %s21_s20   ;;  %s1878_s19 = sphi %s1939_s19, %s2298_s19   ;;  %s1874_s18 = sphi %s1937_s18, %s2297_s18   ;;  %s1870_s17 = sphi %s1935_s17, %s2296_s17   ;;  %s1866_s16 = sphi %s1933_s16, %s2295_s16   ;;  %s1862_s15 = sphi %s1931_s15, %s2294_s15  }
   0x8   : > { %p53_p0 = scmp.ne.s32.totalorder %s1866_s16, %s1862_s15  ;;  %p1965_p1 = scmp.eq.s32.totalorder %s1413_s21, 0 }
   0x9   : > { %p1969_p2 = scmp.eq.s32.totalorder %s1413_s21, 1  ;;  %p146_p3 = scmp.eq.s32.totalorder %s1414_s22, 1 }
   0xa   : > { %p1975_p4 = por %p1965_p1, %p53_p0  ;;  %p1415_p5 = scmp.ge.s32.totalorder %s1882_s20, 1 }
   0xb   : > { %p1980_p6 = por %p146_p3, %p53_p0  ;;  %p153_p7 = scmp.lt.s32.totalorder %s1882_s20, 3 }
   0xc   : > { %s1884_s28 = smov [#allocation6]   ;;  %s1885_s5 = smov [#allocation8]  }
   0xd   : > { %s2285_s26 = scalar_select %p1980_p6, 1, 0 }
   0xe   : > { %p1985_p8 = pnand %p1415_p5, %p153_p7  ;;  %s165_s29 = sshll.u32 %s1884_s28, 4  ;;  %s166_s29 = int_to_ptr.vmem [resolvable:$true] %s165_s29 }
   0xf   : > { %s178_s6 = sshll.u32 %s1885_s5, 4  ;;  %s1729_s7 = scalar_lea.vmem %s166_s29, 512  ;;  %s179_s6 = int_to_ptr.vmem [resolvable:$true] %s178_s6 }
  0x10   : > { %p1597_p9 = pneg %p1985_p8  ;;  %p1730_p13 = scmp.ne.s32.totalorder %s166_s29, %s1729_s7 }
  0x11   : > { %p1737_p5 = scmp.lt.s32.totalorder %s166_s29, %s166_s29  ;;  %p1738_p7 = scmp.lt.s32.totalorder %s1729_s7, %s1729_s7 }
  0x12   : > { %p1994_p11 = pnand %p1597_p9, %p1965_p1 }
  0x13   : > { %p1739_p10 = por %p1738_p7, %p1737_p5 }
  0x14   : > { %p1720_p12 = pneg %p1994_p11 }
  0x16   : > { %p1732_p0 = pnand %p1730_p13, %p1720_p12 }
  0x18   : > { %p1733_p3 = pneg %p1732_p0 }
  0x1a   : > { %p1740_p9 = pnand %p1739_p10, %p1733_p3 }
  0x1c   : > { %1743 = shalt.err (!%p1740_p9)
}
  0x1d   : > { %s2280_s8 = smov 128   ;;  %s2281_s9 = smov 8  }
  0x1e   : > { %1600 = dma.hbm_to_vmem [thread:$0]  (!%p1994_p11), %s2276_s1, 512, %s166_s29, [#allocation7], %s2280_s8, %s2280_s8, %s2281_s9  }
  0x1f   : > { %s1755_s12 = scalar_lea.vmem %s179_s6, 512  ;;  %p1763_p10 = scmp.lt.s32.totalorder %s179_s6, %s179_s6 }
  0x20   : > { %p1756_p13 = scmp.ne.s32.totalorder %s179_s6, %s1755_s12  ;;  %p1764_p3 = scmp.lt.s32.totalorder %s1755_s12, %s1755_s12 }
  0x22   : > { %p1758_p0 = pnand %p1756_p13, %p1720_p12  ;;  %p1765_p7 = por %p1764_p3, %p1763_p10 }
  0x24   : > { %p1759_p5 = pneg %p1758_p0 }
  0x26   : > { %p1766_p9 = pnand %p1765_p7, %p1759_p5 }
  0x28   : > { %1769 = shalt.err (!%p1766_p9)
}
  0x29   : > { %1603 = dma.hbm_to_vmem [thread:$0]  (!%p1994_p11), %s2277_s2, 512, %s179_s6, [#allocation7], %s2280_s8, %s2280_s8, %s2281_s9  }
  0x2a   : > { %s33_s21 = sadd.s32 1, %s1878_s19  ;;  %s40_s22 = sadd.s32 1, %s1870_s17 }
  0x2b   : > { %p35_p12 = scmp.ge.s32.totalorder %s33_s21, 2  ;;  %p47_p13 = scmp.ne.s32.totalorder %s1870_s17, %s1866_s16 }
  0x2c   : > { %p48_p0 = scmp.eq.s32.totalorder %s1882_s20, 0  ;;  %p1614_p5 = scmp.lt.s32.totalorder %s1882_s20, 2 }
  0x2d   : > { %s2300_s21 = smov (%p35_p12, %s33_s21), 0  ;;  %p2032_p3 = por %p1969_p2, %p47_p13 }
  0x2e   : > { %p49_p10 = por %p48_p0, %p47_p13  ;;  %s37_s29 = ssub.s32 %s1878_s19, %s2300_s21 }
  0x2f   : > { %s195_s30 = sand.u32 1, %s1870_s17   ;;  %p38_p7 = scmp.eq.s32.totalorder %s37_s29, 0 }
  0x30   : > { %s1419_s5 = sshll.u32 %s195_s30, 4  ;;  %s1461_s6 = sshll.u32 %s1878_s19, 8 }
  0x31   : > { %s2041_s7 = scalar_select %p38_p7, %s1870_s17, %s40_s22  }
  0x32   : > { %s205_s12 = scalar_lea.hbm %s2275_s0, %s1461_s6  ;;  %s199_s13 = scalar_lea.vmem [#allocation3], %s1419_s5 }
  0x33   : > { %s206_s14 = sshll.u32 %s199_s13, 4  ;;  %p2048_p11 = pnand %p1614_p5, %p49_p10  ;;  %s207_s14 = int_to_ptr.vmem [resolvable:$true] %s206_s14 }
  0x34   : > { %s196_s8 = scalar_lea.sflag [#allocation4], %s195_s30  ;;  %s1783_s29 = scalar_lea.vmem %s207_s14, 256 }
  0x35   : > { %p1772_p2 = pneg %p2048_p11  ;;  %p1784_p9 = scmp.ne.s32.totalorder %s207_s14, %s1783_s29 }
  0x36   : > { %s1888_s22 = smov [#allocation3]  }
  0x37   : > { %p1786_p12 = pnand %p1784_p9, %p1772_p2  ;;  %s1788_s9 = sshll.u32 %s1888_s22, 4  ;;  %s1789_s9 = int_to_ptr.vmem [resolvable:$false] %s1788_s9 }
  0x38   : > { %s1790_s6 = scalar_lea.vmem %s1789_s9, 512  ;;  %p1791_p0 = scmp.lt.s32.totalorder %s207_s14, %s1789_s9 }
  0x39   : > { %p1787_p13 = pneg %p1786_p12  ;;  %p1792_p7 = scmp.lt.s32.totalorder %s1790_s6, %s1783_s29 }
  0x3b   : > { %p1793_p6 = por %p1792_p7, %p1791_p0 }
  0x3d   : > { %p1794_p5 = pnand %p1793_p6, %p1787_p13 }
  0x3f   : > { %1797 = shalt.err (!%p1794_p5)
}
  0x40   : > { %s2290_s5 = smov 8   ;;  %s2291_s10 = smov 128  }
  0x41   : > { %1607 = dma.hbm_to_vmem [thread:$0]  (!%p2048_p11), %s205_s12, 256, %s207_s14, %s196_s8, %s2291_s10, %s2291_s10, %s2290_s5  }
  0x42   : > { %218 = sbr.rel (%p1985_p8) target bundleno = 2378 (0x94a), region = 36  ;;  %s2062_s30 = sand.u32 (!%p1985_p8), 1, %s1866_s16  }
  0x43   : > { %s1423_s9 = sshll.u32 (!%p1985_p8), %s2062_s30, 4  ;;  %s221_s11 = scalar_lea.sflag (!%p1985_p8), [#allocation4], %s2062_s30 }
  0x44   : > { %s224_s13 = scalar_lea.vmem (!%p1985_p8), [#allocation3], %s1423_s9 }
  0x47   : > { %1849 = dma.done.wait (%p1975_p4), %s221_s11, 256  }
  0x48   : > { %1851 = vsyncadd (%p1975_p4), %s221_s11, 4294967040 }
  0x49   : > { %1853 = dma.done.wait (%p1965_p1), [#allocation7], 1024  }
  0x4a   : > { %1855 = vsyncadd (%p1965_p1), [#allocation7], 4294966272  ;;  %vm268_vm0 = vcmask 261120   ;;  %v278_v0 = vld [vmem:[#allocation6 + $0x18] sm:$0xff]  ;;  %v277_v1 = vld [vmem:[#allocation6 + $0x10] sm:$0xff]  ;;  %vm371_vm1 = vcmask 64512   ;;  %v361_v11 = vlaneseq }
  0x4b   : > { %1507 = vmatprep.subr.mxu0 %v278_v0  ;;  %v271_v2 = vld [vmem:[%s224_s13] sm:$0xff]  ;;  %v276_v3 = vld [vmem:[#allocation6 + $0x8] sm:$0xff]  ;;  %s1889_s23 = smov 96   ;;  %s1890_s25 = smov 64   ;;  %v1893_v13 = vmov -1e+30  }
  0x4c   : > { %1508 = vmatpush3.msra.mxu0 %v278_v0  ;;  %1515 = vmatprep.mubr.msk.f32.mxu0 %vm268_vm0, %v271_v2  ;;  %v275_v4 = vld [vmem:[#allocation6] sm:$0xff]  ;;  %v272_v5 = vld [vmem:[%s224_s13 + $0x8] sm:$0xff]  ;;  %s1891_s27 = smov 88   ;;  %s1892_s8 = smov 120   ;;  %v362_v12 = vand.u32 127, %v361_v11  ;;  %vm455_vm3 = vcmask 130048  }
  0x4d   : > { %1509 = vmatprep.subr.mxu0 %v277_v1  ;;  %s1894_s12 = smov 56   ;;  %s1895_s14 = smov 80   ;;  %vm1193_vm4 = vcmask 195584  }
  0x4e   : > { %1510 = vmatpush3.msra.mxu0 %v277_v1  ;;  %vm363_vm2 = vcmp.lt.s32.totalorder %v362_v12, 13  ;;  %s1896_s24 = smov 112   ;;  %s1897_s29 = smov 48  }
  0x4f   : > { %1511 = vmatprep.subr.mxu0 %v276_v3  ;;  %v2098_v14 = vsel %vm363_vm2, 0.0, %v1893_v13  ;;  %s1898_s22 = smov 72   ;;  %s1899_s6 = smov 104  }
  0x50   : > { %1512 = vmatpush3.msra.mxu0 %v276_v3  ;;  %s1900_s5 = smov 40   ;;  %s1901_s10 = smov 8  }
  0x51   : > { %1513 = vmatprep.subr.mxu0 %v275_v4  ;;  %s1902_s11 = smov 16  }
  0x52   : > { %1514 = vmatpush3.msra.mxu0 %v275_v4 }
  0x53   : > { %1516 = vmatmul.mubr.msk.f32.vlgmr.msra.gmra.mxu0 %vm268_vm0, %v272_v5 }
 0x113   : > { %v2078_v6 = vpop.f32.mrf.mxu0 }
 0x114   : > { %369 = vrot.lane.b32.xlu0 %v2078_v6, %s1889_s23 }
 0x115   : > { %v2081_v7 = vpop.f32.mrf.mxu0 }
 0x116   : > { %1522 = vmatprep.mubr.msk.f32.mxu1 %vm371_vm1, %v2081_v7 }
 0x118   : > { %367 = vrot.lane.b32.xlu0 %v2081_v7, %s1889_s23 }
 0x11c   : > { %476 = vrot.lane.b32.xlu0 %v2078_v6, %s1890_s25 }
 0x120   : > { %571 = vrot.lane.b32.xlu0 %v2078_v6, %s1891_s27 }
 0x124   : > { %569 = vrot.lane.b32.xlu0 %v2081_v7, %s1891_s27  ;;  %s1462_s27 = sshll.u32 %s1874_s18, 8  ;;  %s1296_s18 = scalar_lea.sflag [#allocation5], %s2062_s30 }
 0x128   : > { %565 = vrot.lane.b32.xlu0 %v2081_v7, %s1892_s8 }
 0x12c   : > { %567 = vrot.lane.b32.xlu0 %v2078_v6, %s1892_s8  ;;  %s256_s8 = scalar_lea.vmem [#allocation9], %s1423_s9  ;;  %s1904_s9 = smov [#allocation9]  }
 0x186   : > { %v370_v8 = vpop.permute.xlu0 %369 }
 0x187   : > { %1518 = vmatprep.subr.msk.mxu1 %vm371_vm1, %v370_v8 }
 0x188   : > { %1519 = vmatpush3.xpose.msk.msra.mxu1 %vm371_vm1, %v370_v8 }
 0x18a   : > { %v368_v9 = vpop.permute.xlu0 %367 }
 0x18b   : > { %1520 = vmatprep.subr.msk.mxu1 %vm371_vm1, %v368_v9 }
 0x18c   : > { %1521 = vmatpush3.xpose.msk.msra.mxu1 %vm371_vm1, %v368_v9 }
 0x18e   : > { %v477_v10 = vpop.permute.xlu0 %476 }
 0x18f   : > { %1523 = vmatmul.mubr.msk.f32.vlgmr.msra.gmra.mxu1 %vm371_vm1, %v2078_v6  ;;  %1525 = vmatprep.subr.mxu1 %v477_v10 }
 0x190   : > { %1526 = vmatpush3.msra.mxu1 %v477_v10 }
 0x192   : > { %v572_v28 = vpop.permute.xlu0 %571 }
 0x196   : > { %v570_v29 = vpop.permute.xlu0 %569 }
 0x19a   : > { %v566_v32 = vpop.permute.xlu0 %565 }
 0x19e   : > { %v568_v33 = vpop.permute.xlu0 %567 }
 0x24f   : > { %v1524_v15 = vpop.f32.mrf.mxu1 }
 0x250   : > { %v452_v16 = vadd.f32 %v1524_v15, %v2098_v14 }
 0x251   : > { %v446_v17 = vpop.f32.mrf.mxu1 }
 0x252   : > { %v447_v18 = vadd.f32 %v446_v17, %v2098_v14  ;;  %v459_v19 = vsel %vm455_vm3, %v452_v16, -inf }
 0x253   : > { %460 = vmax.xlane.f32.xlu1 %v459_v19 }
 0x254   : > { %v456_v20 = vsel %vm455_vm3, %v447_v18, -inf }
 0x257   : > { %457 = vmax.xlane.f32.xlu1 %v456_v20 }
 0x268   : > { %474 = vrot.lane.b32.xlu1 %v2081_v7, %s1890_s25  ;;  %s1903_s25 = smov 24  }
 0x26c   : > { %674 = vrot.lane.b32.xlu1 %v2081_v7, %s1894_s12 }
 0x2dc   : > { %v461_v21 = vpop.xlane.xlu1 %460 }
 0x2dd   : > { %v463_v22 = vsub.f32 %v452_v16, %v461_v21 }
 0x2df   : > { %v466_v25 = vmul.f32 1.442695, %v463_v22 }
 0x2e0   : > { %v458_v23 = vpop.xlane.xlu1 %457 }
 0x2e1   : > { %v462_v24 = vsub.f32 %v447_v18, %v458_v23 }
 0x2e3   : > { %v464_v26 = vmul.f32 1.442695, %v462_v24 }
 0x2e4   : > { %v475_v27 = vpop.permute.xlu1 %474 }
 0x2e5   : > { %1686 = vpow2.f32 %v464_v26  ;;  %1527 = vmatprep.subr.mxu1 %v475_v27 }
 0x2e6   : > { %1688 = vpow2.f32 %v466_v25  ;;  %1528 = vmatpush3.msra.mxu1 %v475_v27 }
 0x2e7   : > { %1532 = vmatprep.subr.msk.mxu1 %vm371_vm1, %v572_v28 }
 0x2e8   : > { %v675_v42 = vpop.permute.xlu1 %674 }
 0x2f2   : > { %v2109_v30 = vpop.eup %1686 }
 0x2f3   : > { %v2111_v31 = vpop.eup %1688  ;;  %1529 = vmatprep.mubr.msk.f32.mxu1 %vm455_vm3, %v2109_v30 }
 0x2f4   : > { %1530 = vmatmul.mubr.msk.f32.vlgmr.msra.gmra.mxu1 %vm455_vm3, %v2111_v31 }
 0x2f5   : > { %1533 = vmatpush3.xpose.msk.msra.mxu1 %vm371_vm1, %v572_v28  ;;  %1536 = vmatprep.mubr.msk.f32.mxu1 %vm371_vm1, %v566_v32 }
 0x2f6   : > { %1534 = vmatprep.subr.msk.mxu1 %vm371_vm1, %v570_v29 }
 0x2f9   : > { %1535 = vmatpush3.xpose.msk.msra.mxu1 %vm371_vm1, %v570_v29 }
 0x2fc   : > { %1537 = vmatmul.mubr.msk.f32.vlgmr.msra.gmra.mxu1 %vm371_vm1, %v568_v33 }
 0x3b4   : > { %v2122_v34 = vpop.f32.mrf.mxu1 }
 0x3b6   : > { %v2124_v35 = vpop.f32.mrf.mxu1 }
 0x3bc   : > { %v1538_v36 = vpop.f32.mrf.mxu1 }
 0x3bd   : > { %v653_v37 = vadd.f32 %v1538_v36, %v2098_v14 }
 0x3be   : > { %v647_v38 = vpop.f32.mrf.mxu1 }
 0x3bf   : > { %v648_v39 = vadd.f32 %v647_v38, %v2098_v14  ;;  %v659_v40 = vsel %vm455_vm3, %v653_v37, -inf }
 0x3c0   : > { %660 = vmax.xlane.f32.xlu0 %v659_v40 }
 0x3c1   : > { %v656_v41 = vsel %vm455_vm3, %v648_v39, -inf }
 0x3c2   : > { %657 = vmax.xlane.f32.xlu1 %v656_v41 }
 0x3d3   : > { %771 = vrot.lane.b32.xlu1 %v2078_v6, %s1895_s14 }
 0x3d6   : > { %676 = vrot.lane.b32.xlu0 %v2078_v6, %s1894_s12  ;;  %s1309_s12 = sshll.u32 %s256_s8, 4  ;;  %s2225_s12 = int_to_ptr.vmem [resolvable:$true] %s1309_s12 }
 0x3d7   : > { %765 = vrot.lane.b32.xlu1 %v2081_v7, %s1896_s24 }
 0x3da   : > { %769 = vrot.lane.b32.xlu0 %v2081_v7, %s1895_s14 }
 0x3db   : > { %874 = vrot.lane.b32.xlu1 %v2081_v7, %s1897_s29 }
 0x3de   : > { %767 = vrot.lane.b32.xlu0 %v2078_v6, %s1896_s24 }
 0x449   : > { %v661_v43 = vpop.xlane.xlu0 %660 }
 0x44a   : > { %v663_v44 = vsub.f32 %v653_v37, %v661_v43  ;;  %v468_v43 = vsel %vm455_vm3, %v2109_v30, 0.0 }
 0x44b   : > { %v658_v45 = vpop.xlane.xlu1 %657 }
 0x44c   : > { %v662_v46 = vsub.f32 %v648_v39, %v658_v45  ;;  %v666_v47 = vmul.f32 1.442695, %v663_v44 }
 0x44d   : > { %v677_v48 = vpop.permute.xlu0 %676 }
 0x44e   : > { %v664_v49 = vmul.f32 1.442695, %v662_v46  ;;  %1539 = vmatprep.subr.mxu0 %v677_v48 }
 0x44f   : > { %1540 = vmatpush3.msra.mxu0 %v677_v48  ;;  %v772_v50 = vpop.permute.xlu1 %771 }
 0x450   : > { %1690 = vpow2.f32 %v664_v49  ;;  %1541 = vmatprep.subr.mxu0 %v675_v42 }
 0x451   : > { %1692 = vpow2.f32 %v666_v47  ;;  %1542 = vmatpush3.msra.mxu0 %v675_v42  ;;  %v770_v54 = vpop.permute.xlu0 %769  ;;  %v471_v42 = vsel %vm455_vm3, %v2111_v31, 0.0 }
 0x452   : > { %1546 = vmatprep.subr.msk.mxu0 %vm371_vm1, %v772_v50 }
 0x453   : > { %v766_v53 = vpop.permute.xlu1 %765 }
 0x455   : > { %v768_v55 = vpop.permute.xlu0 %767 }
 0x457   : > { %v875_v0 = vpop.permute.xlu1 %874 }
 0x45d   : > { %v2139_v51 = vpop.eup %1690 }
 0x45e   : > { %v2141_v52 = vpop.eup %1692  ;;  %1543 = vmatprep.mubr.msk.f32.mxu0 %vm455_vm3, %v2139_v51  ;;  %v668_v26 = vsel %vm455_vm3, %v2139_v51, 0.0 }
 0x45f   : > { %1544 = vmatmul.mubr.msk.f32.vlgmr.msra.gmra.mxu0 %vm455_vm3, %v2141_v52  ;;  %v671_v25 = vsel %vm455_vm3, %v2141_v52, 0.0 }
 0x460   : > { %1547 = vmatpush3.xpose.msk.msra.mxu0 %vm371_vm1, %v772_v50  ;;  %1550 = vmatprep.mubr.msk.f32.mxu0 %vm371_vm1, %v766_v53 }
 0x461   : > { %1548 = vmatprep.subr.msk.mxu0 %vm371_vm1, %v770_v54 }
 0x464   : > { %1549 = vmatpush3.xpose.msk.msra.mxu0 %vm371_vm1, %v770_v54  ;;  %v1202_v54 = vld [vmem:[#allocation8 + $0x18] sm:$0xff] }
 0x467   : > { %1551 = vmatmul.mubr.msk.f32.vlgmr.msra.gmra.mxu0 %vm371_vm1, %v768_v55  ;;  %v1201_v55 = vld [vmem:[#allocation8 + $0x10] sm:$0xff] }
 0x51f   : > { %v2152_v56 = vpop.f32.mrf.mxu0 }
 0x521   : > { %v2154_v57 = vpop.f32.mrf.mxu0 }
 0x527   : > { %v1552_v58 = vpop.f32.mrf.mxu0 }
 0x528   : > { %v853_v59 = vadd.f32 %v1552_v58, %v2098_v14 }
 0x529   : > { %v847_v60 = vpop.f32.mrf.mxu0 }
 0x52a   : > { %v848_v61 = vadd.f32 %v847_v60, %v2098_v14  ;;  %v859_v62 = vsel %vm455_vm3, %v853_v59, -inf  ;;  %v1427_v60 = vld [vmem:[%s2278_s3] ss:$0 sm:$0xff] }
 0x52b   : > { %860 = vmax.xlane.f32.xlu0 %v859_v62  ;;  %270 = vst.msk [vmem:[#allocation2 + $0x8] sm:$0xff] %vm268_vm0, %v1427_v60  ;;  %269 = vst.msk [vmem:[#allocation2] sm:$0xff] %vm268_vm0, %v1427_v60 }
 0x52c   : > { %v856_v63 = vsel %vm455_vm3, %v848_v61, -inf }
 0x52d   : > { %857 = vmax.xlane.f32.xlu1 %v856_v63 }
 0x53e   : > { %971 = vrot.lane.b32.xlu1 %v2078_v6, %s1898_s22 }
 0x541   : > { %876 = vrot.lane.b32.xlu0 %v2078_v6, %s1897_s29  ;;  %s2222_s29 = scalar_lea.hbm %s2279_s4, %s1462_s27 }
 0x542   : > { %965 = vrot.lane.b32.xlu1 %v2081_v7, %s1899_s6 }
 0x545   : > { %969 = vrot.lane.b32.xlu0 %v2081_v7, %s1898_s22  ;;  %s1798_s22 = scalar_lea.vmem %s2225_s12, 256 }
 0x546   : > { %p1799_p1 = scmp.ne.s32.totalorder %s2225_s12, %s1798_s22 }
 0x548   : > { %p1800_p4 = pnand %p1799_p1, %p2032_p3 }
 0x549   : > { %967 = vrot.lane.b32.xlu0 %v2078_v6, %s1899_s6  ;;  %s1802_s6 = sshll.u32 %s1904_s9, 4  ;;  %s1803_s6 = int_to_ptr.vmem [resolvable:$false] %s1802_s6 }
 0x54a   : > { %p1801_p6 = pneg %p1800_p4  ;;  %p1805_p8 = scmp.lt.s32.totalorder %s2225_s12, %s1803_s6 }
 0x5b4   : > { %v861_v1 = vpop.xlane.xlu0 %860 }
 0x5b5   : > { %v863_v2 = vsub.f32 %v853_v59, %v861_v1  ;;  %v1199_v59 = vld [vmem:[#allocation8] sm:$0xff] }
 0x5b6   : > { %v858_v3 = vpop.xlane.xlu1 %857 }
 0x5b7   : > { %v862_v4 = vsub.f32 %v848_v61, %v858_v3  ;;  %v866_v5 = vmul.f32 1.442695, %v863_v2 }
 0x5b8   : > { %v877_v8 = vpop.permute.xlu0 %876 }
 0x5b9   : > { %v864_v9 = vmul.f32 1.442695, %v862_v4  ;;  %1553 = vmatprep.subr.mxu1 %v877_v8 }
 0x5ba   : > { %1554 = vmatpush3.msra.mxu1 %v877_v8  ;;  %v972_v10 = vpop.permute.xlu1 %971 }
 0x5bb   : > { %1694 = vpow2.f32 %v864_v9  ;;  %1555 = vmatprep.subr.mxu1 %v875_v0 }
 0x5bc   : > { %1696 = vpow2.f32 %v866_v5  ;;  %1556 = vmatpush3.msra.mxu1 %v875_v0  ;;  %v970_v15 = vpop.permute.xlu0 %969 }
 0x5bd   : > { %1560 = vmatprep.subr.msk.mxu1 %vm371_vm1, %v972_v10 }
 0x5be   : > { %v966_v13 = vpop.permute.xlu1 %965 }
 0x5c0   : > { %v968_v16 = vpop.permute.xlu0 %967 }
 0x5c8   : > { %v1695_v11 = vpop.eup %1694 }
 0x5c9   : > { %v1697_v12 = vpop.eup %1696  ;;  %1557 = vmatprep.mubr.msk.f32.mxu1 %vm455_vm3, %v1695_v11 }
 0x5ca   : > { %1558 = vmatmul.mubr.msk.f32.vlgmr.msra.gmra.mxu1 %vm455_vm3, %v1697_v12  ;;  %v871_v27 = vsel %vm455_vm3, %v1697_v12, 0.0 }
 0x5cb   : > { %1561 = vmatpush3.xpose.msk.msra.mxu1 %vm371_vm1, %v972_v10  ;;  %1564 = vmatprep.mubr.msk.f32.mxu1 %vm371_vm1, %v966_v13 }
 0x5cc   : > { %1562 = vmatprep.subr.msk.mxu1 %vm371_vm1, %v970_v15 }
 0x5cf   : > { %1563 = vmatpush3.xpose.msk.msra.mxu1 %vm371_vm1, %v970_v15 }
 0x5d2   : > { %1565 = vmatmul.mubr.msk.f32.vlgmr.msra.gmra.mxu1 %vm371_vm1, %v968_v16 }
 0x68a   : > { %v2174_v17 = vpop.f32.mrf.mxu1 }
 0x68c   : > { %v952_v18 = vpop.f32.mrf.mxu1 }
 0x692   : > { %v1566_v19 = vpop.f32.mrf.mxu1 }
 0x693   : > { %v1053_v20 = vadd.f32 %v1566_v19, %v2098_v14 }
 0x694   : > { %v1047_v21 = vpop.f32.mrf.mxu1 }
 0x695   : > { %v1048_v22 = vadd.f32 %v1047_v21, %v2098_v14  ;;  %v1059_v23 = vsel %vm455_vm3, %v1053_v20, -inf  ;;  %v868_v14 = vsel %vm455_vm3, %v1695_v11, 0.0 }
 0x696   : > { %1060 = vmax.xlane.f32.xlu0 %v1059_v23 }
 0x697   : > { %v1056_v24 = vsel %vm455_vm3, %v1048_v22, -inf }
 0x698   : > { %1057 = vmax.xlane.f32.xlu1 %v1056_v24 }
 0x6a9   : > { %1074 = vrot.lane.b32.xlu1 %v2081_v7, %s1900_s5 }
 0x6ac   : > { %1076 = vrot.lane.b32.xlu0 %v2078_v6, %s1900_s5  ;;  %s1804_s5 = scalar_lea.vmem %s1803_s6, 512 }
 0x6ad   : > { %p1806_p10 = scmp.lt.s32.totalorder %s1804_s5, %s1798_s22 }
 0x6af   : > { %p1807_p11 = por %p1806_p10, %p1805_p8 }
 0x6b1   : > { %p1808_p2 = pnand %p1807_p11, %p1801_p6 }
 0x6cb   : > { %672 = vadd.xlane.f32.xlu0 %v671_v25 }
 0x6cd   : > { %669 = vadd.xlane.f32.xlu1 %v668_v26 }
 0x6cf   : > { %869 = vadd.xlane.f32.xlu0 %v868_v14 }
 0x6d1   : > { %872 = vadd.xlane.f32.xlu1 %v871_v27 }
 0x71f   : > { %v1061_v28 = vpop.xlane.xlu0 %1060 }
 0x720   : > { %v1063_v29 = vsub.f32 %v1053_v20, %v1061_v28 }
 0x721   : > { %v1058_v32 = vpop.xlane.xlu1 %1057 }
 0x722   : > { %v1066_v7 = vmul.f32 1.442695, %v1063_v29  ;;  %v1062_v33 = vsub.f32 %v1048_v22, %v1058_v32 }
 0x723   : > { %v1077_v6 = vpop.permute.xlu0 %1076 }
 0x724   : > { %1698 = vpow2.f32 %v1066_v7  ;;  %v1064_v36 = vmul.f32 1.442695, %v1062_v33  ;;  %1567 = vmatprep.subr.mxu0 %v1077_v6 }
 0x725   : > { %1568 = vmatpush3.msra.mxu0 %v1077_v6  ;;  %v1075_v37 = vpop.permute.xlu1 %1074 }
 0x726   : > { %1700 = vpow2.f32 %v1064_v36  ;;  %1569 = vmatprep.subr.mxu0 %v1075_v37 }
 0x727   : > { %1570 = vmatpush3.msra.mxu0 %v1075_v37 }
 0x728   : > { %1574 = vmatprep.subr.mxu0 %v1202_v54 }
 0x731   : > { %v1699_v38 = vpop.eup %1698 }
 0x732   : > { %v1071_v39 = vsel %vm455_vm3, %v1699_v38, 0.0 }
 0x733   : > { %v1701_v40 = vpop.eup %1700  ;;  %1072 = vadd.xlane.f32.xlu1 %v1071_v39 }
 0x734   : > { %1571 = vmatprep.mubr.msk.f32.mxu0 %vm455_vm3, %v1701_v40  ;;  %v1068_v41 = vsel %vm455_vm3, %v1701_v40, 0.0 }
 0x735   : > { %1069 = vadd.xlane.f32.xlu0 %v1068_v41  ;;  %1572 = vmatmul.mubr.msk.f32.vlgmr.msra.gmra.mxu0 %vm455_vm3, %v1699_v38 }
 0x736   : > { %1575 = vmatpush3.msra.mxu0 %v1202_v54 }
 0x737   : > { %472 = vadd.xlane.f32.xlu1 %v471_v42  ;;  %1576 = vmatprep.subr.mxu0 %v1201_v55 }
 0x738   : > { %1577 = vmatpush3.msra.mxu0 %v1201_v55 }
 0x739   : > { %469 = vadd.xlane.f32.xlu0 %v468_v43 }
 0x754   : > { %v673_v44 = vpop.xlane.xlu0 %672 }
 0x755   : > { %1702 = vrcp.f32 %v673_v44 }
 0x756   : > { %v670_v45 = vpop.xlane.xlu1 %669 }
 0x757   : > { %1704 = vrcp.f32 %v670_v45 }
 0x758   : > { %v870_v46 = vpop.xlane.xlu0 %869 }
 0x759   : > { %1706 = vrcp.f32 %v870_v46 }
 0x75a   : > { %v873_v47 = vpop.xlane.xlu1 %872 }
 0x75b   : > { %1708 = vrcp.f32 %v873_v47 }
 0x762   : > { %v1703_v48 = vpop.eup %1702 }
 0x763   : > { %v764_v49 = vmul.f32 %v1703_v48, %v2152_v56 }
 0x764   : > { %v1705_v50 = vpop.eup %1704 }
 0x765   : > { %1169 = vrot.lane.b32.xlu1 %v764_v49, %s1901_s10  ;;  %v763_v31 = vmul.f32 %v1705_v50, %v2154_v57  ;;  %v1200_v57 = vld [vmem:[#allocation8 + $0x8] sm:$0xff] }
 0x766   : > { %v1707_v51 = vpop.eup %1706  ;;  %1578 = vmatprep.subr.mxu0 %v1200_v57 }
 0x767   : > { %1167 = vrot.lane.b32.xlu0 %v763_v31, %s1901_s10  ;;  %v963_v30 = vmul.f32 %v1707_v51, %v952_v18  ;;  %1579 = vmatpush3.msra.mxu0 %v1200_v57 }
 0x768   : > { %v1709_v52 = vpop.eup %1708  ;;  %1580 = vmatprep.subr.mxu0 %v1199_v59 }
 0x769   : > { %1175 = vrot.lane.b32.xlu1 %v963_v30, %s1902_s11  ;;  %v964_v53 = vmul.f32 %v1709_v52, %v2174_v17  ;;  %1581 = vmatpush3.msra.mxu0 %v1199_v59 }
 0x76b   : > { %1177 = vrot.lane.b32.xlu0 %v964_v53, %s1902_s11 }
 0x7bc   : > { %v1073_v56 = vpop.xlane.xlu1 %1072 }
 0x7bd   : > { %1710 = vrcp.f32 %v1073_v56 }
 0x7be   : > { %v1070_v58 = vpop.xlane.xlu0 %1069 }
 0x7bf   : > { %1712 = vrcp.f32 %v1070_v58 }
 0x7c0   : > { %v473_v4 = vpop.xlane.xlu1 %472 }
 0x7c2   : > { %v470_v3 = vpop.xlane.xlu0 %469 }
 0x7c3   : > { %1714 = vrcp.f32 %v470_v3 }
 0x7c4   : > { %1716 = vrcp.f32 %v473_v4 }
 0x7ca   : > { %v1711_v61 = vpop.eup %1710 }
 0x7cc   : > { %v1713_v0 = vpop.eup %1712 }
 0x7d0   : > { %v1715_v9 = vpop.eup %1714 }
 0x7d1   : > { %v1717_v10 = vpop.eup %1716  ;;  %v563_v11 = vmul.f32 %v1715_v9, %v2124_v35  ;;  %v1197_v35 = vld [vmem:[#allocation2 + $0x8] sm:$0xff] }
 0x7d2   : > { %v564_v16 = vmul.f32 %v1717_v10, %v2122_v34  ;;  %v1196_v34 = vld [vmem:[#allocation2] sm:$0xff] }
 0x7d7   : > { %v1170_v8 = vpop.permute.xlu1 %1169 }
 0x7d8   : > { %v1190_v18 = vsel %vm371_vm1, %v564_v16, %v1170_v8 }
 0x7d9   : > { %v1168_v5 = vpop.permute.xlu0 %1167 }
 0x7da   : > { %v1189_v15 = vsel %vm371_vm1, %v563_v11, %v1168_v5 }
 0x7db   : > { %v1176_v13 = vpop.permute.xlu1 %1175 }
 0x7dc   : > { %v1191_v19 = vsel %vm455_vm3, %v1189_v15, %v1176_v13 }
 0x7dd   : > { %v1178_v12 = vpop.permute.xlu0 %1177 }
 0x7de   : > { %v1192_v21 = vsel %vm455_vm3, %v1190_v18, %v1178_v12 }
 0x7f5   : > { %v1573_v62 = vpop.f32.mrf.mxu0 }
 0x7f6   : > { %v1164_v63 = vmul.f32 %v1711_v61, %v1573_v62 }
 0x7f7   : > { %v1152_v1 = vpop.f32.mrf.mxu0 }
 0x7f8   : > { %v1163_v2 = vmul.f32 %v1713_v0, %v1152_v1  ;;  %1185 = vrot.lane.b32.xlu0 %v1164_v63, %s1903_s25 }
 0x7fa   : > { %1183 = vrot.lane.b32.xlu1 %v1163_v2, %s1903_s25 }
 0x86a   : > { %v1186_v17 = vpop.permute.xlu0 %1185 }
 0x86b   : > { %v1195_v23 = vsel %vm1193_vm4, %v1192_v21, %v1186_v17 }
 0x86c   : > { %v1184_v20 = vpop.permute.xlu1 %1183 }
 0x86d   : > { %v1194_v22 = vsel %vm1193_vm4, %v1191_v19, %v1184_v20 }
 0x86e   : > { %1582 = vmatprep.mubr.msk.f32.mxu0 %vm268_vm0, %v1194_v22 }
 0x86f   : > { %1583 = vmatmul.mubr.msk.f32.vlgmr.msra.gmra.mxu0 %vm268_vm0, %v1195_v23 }
 0x92f   : > { %v1584_v24 = vpop.f32.mrf.mxu0 }
 0x930   : > { %v1285_v25 = vadd.f32 %v1584_v24, %v1197_v35 }
 0x931   : > { %v1275_v26 = vpop.f32.mrf.mxu0 }
 0x932   : > { %1287 = vst.msk [vmem:[#allocation2 + $0x8] sm:$0xff] %vm268_vm0, %v1285_v25  ;;  %v1284_v14 = vadd.f32 %v1275_v26, %v1196_v34 }
 0x934   : > { %1286 = vst.msk [vmem:[#allocation2] sm:$0xff] %vm268_vm0, %v1284_v14 }
 0x939   : > { %v1292_v27 = vld [vmem:[#allocation2 + $0x8] sm:$0xff] }
 0x93a   : > { %1294 = vst.msk [vmem:[%s256_s8 + $0x8] sm:$0xff] %vm268_vm0, %v1292_v27 }
 0x93b   : > { %v1291_v28 = vld [vmem:[#allocation2] sm:$0xff] }
 0x93c   : > { %1293 = vst.msk [vmem:[%s256_s8] sm:$0xff] %vm268_vm0, %v1291_v28 }
 0x93d   : > { %1811 = shalt.err (!%p1808_p2)
}
 0x93e   : > { %s1812_s11 = scalar_lea.hbm %s2222_s29, 256  ;;  %s1816_s25 = scalar_lea.hbm %s2279_s4, 512 }
 0x93f   : > { %p1813_p9 = scmp.ne.s32.totalorder %s2222_s29, %s1812_s11  ;;  %p1817_p0 = scmp.lt.s32.totalorder %s2222_s29, %s2279_s4 }
 0x940   : > { %p1818_p7 = scmp.lt.s32.totalorder %s1816_s25, %s1812_s11 }
 0x941   : > { %p1814_p12 = pnand %p1813_p9, %p2032_p3 }
 0x942   : > { %p1819_p5 = por %p1818_p7, %p1817_p0 }
 0x943   : > { %p1815_p13 = pneg %p1814_p12 }
 0x945   : > { %p1820_p1 = pnand %p1819_p5, %p1815_p13 }
 0x947   : > { %1823 = shalt.err (!%p1820_p1)
}
 0x948   : > { %s1905_s14 = smov 128  }
 0x949   : > { %1595 = dma.vmem_to_hbm [thread:$0]  (%p2032_p3), %s2225_s12, 256, %s2222_s29, %s1296_s18, %s1905_s14, %s1905_s14, %s1901_s10  }
 0x94a PF: > { %s1324_s24 = sand.u32 1, %s1862_s15   ;;  %p2292_p4 = scmp.ne.s32.totalorder %s2285_s26, 0 }
 0x94b   : > { %p2293_p6 = scmp.ge.s32.totalorder %s1882_s20, 2  ;;  %s1325_s22 = scalar_lea.sflag [#allocation5], %s1324_s24 }
 0x94d   : > { %p1609_p8 = pnand %p2293_p6, %p2292_p4 }
 0x94f   : > { %p1610_p10 = pneg %p1609_p8 }
 0x951   : > { %1857 = dma.done.wait (%p1610_p10), %s1325_s22, 256  }
 0x952   : > { %1859 = vsyncadd (%p1610_p10), %s1325_s22, 4294967040  ;;  %s21_s20 = sadd.s32 1, %s1882_s20   ;;  %s2294_s15 = smov %s1866_s16 }
 0x953   : > { %p18_p11 = scmp.ge.s32.totalorder %s21_s20, 4   ;;  %s2295_s16 = smov %s1870_s17 }
 0x954   : > { %s2296_s17 = smov %s2041_s7  ;;  %s2297_s18 = smov %s1878_s19 }
 0x955   : > { %s2298_s19 = smov %s2300_s21  ;;  %20 = sbr.rel (!%p18_p11) target bundleno = 7 (0x7), region = 99 }
 0x95a   :  { %1330 = vsyncpa [#allocation4], 1 }
 0x95b   :  { %1332 = vsyncpa [#allocation4 + $0x1], 1 }
 0x95c   :  { %1333 = vsyncpa [#allocation7], 1 }
 0x95d   :  { %1334 = vsyncpa [#allocation5], 1 }
 0x95e   :  { %1336 = vsyncpa [#allocation5 + $0x1], 1 }

</bundles_post_ra>
